<compile_context>
chip_gen: v7x
topology: tpu7x:2x2x1
jax: 0.10.0
libtpu: 0.0.40
codegen_flags: <defaults>
</compile_context>

<pallas_src>
import functools

import jax
import jax.numpy as jnp
from jax import lax
from jax.experimental import pallas as pl
from jax.experimental.pallas import tpu as pltpu

_LANE = 128
_EPS = 1e-6
# ~4 MiB per input block: 2 inputs x 2 pipeline buffers x 4 MiB = 16 MiB VMEM.
_TARGET_BLOCK_BYTES = 4 * 1024 * 1024


def _pick_sub(n, itemsize):
    """Sub-rows per sample: fills the packed sublane dim for the label dtype
    (int8 -> 32, int16 -> 16, int32/f32 -> 8) while keeping >= 128 columns
    and requiring sub | n (so the reshape stays a free contiguous reshape)."""
    s = {1: 32, 2: 16}.get(itemsize, 8)
    while s > 1 and (n % s != 0 or (n // s) < _LANE):
        s //= 2
    if n % s != 0:
        s = 1
    return s


def _dice_kernel(pred_ref, gt_ref, oi_ref, oa_ref, ob_ref, *,
                 num_classes, derive_last, tile_cols, cols_total,
                 tiles_per_split, full_tiles, needs_mask, lanes):
    """pred_ref / gt_ref : (rows, tile_cols) label tiles (original dtype).
    o{i,a,b}_ref        : (rows, lanes) int32 running per-class counts for the
                          current parallel split (class c lives in lane c)."""
    k = pl.program_id(1)                      # reduction axis (column tiles)

    @pl.when(k == 0)
    def _init():
        oi_ref[...] = jnp.zeros_like(oi_ref)
        oa_ref[...] = jnp.zeros_like(oa_ref)
        ob_ref[...] = jnp.zeros_like(ob_ref)

    pred = pred_ref[...]
    gt = gt_ref[...]
    rows = pred.shape[0]

    def _cat_pad(parts):
        # One lane-dense (rows, lanes) update per quantity per tile.
        pad_w = lanes - len(parts)
        if pad_w:
            parts = parts + [jnp.zeros((rows, pad_w), jnp.int32)]
        return jnp.concatenate(parts, axis=1)

    def _accumulate(valid):
        # TODO(synk): for num_classes >= ~16, accumulate a per-sample confusion
        # matrix on the MXU (one-hot(gt)^T @ one-hot(pred)) instead of this
        # per-class VPU loop (bf16 one-hots on v7x, int8 on v5e/v6e).
        n_explicit = num_classes - 1 if derive_last else num_classes
        i_parts, a_parts, b_parts = [], [], []
        for c in range(n_explicit):
            ep = pred == c
            eg = gt == c
            if valid is not None:
                ep = jnp.logical_and(ep, valid)
                eg = jnp.logical_and(eg, valid)
            both = jnp.logical_and(ep, eg)
            i_parts.append(jnp.sum(both.astype(jnp.int32), axis=1, keepdims=True))
            a_parts.append(jnp.sum(ep.astype(jnp.int32), axis=1, keepdims=True))
            b_parts.append(jnp.sum(eg.astype(jnp.int32), axis=1, keepdims=True))
        if derive_last:
            # Total agreement count; last-class stats are recovered at finalize
            # (valid only when every label lies in [0, num_classes)).
            m = pred == gt
            if valid is not None:
                m = jnp.logical_and(m, valid)
            i_parts.append(jnp.sum(m.astype(jnp.int32), axis=1, keepdims=True))
        oi_ref[...] += _cat_pad(i_parts)
        oa_ref[...] += _cat_pad(a_parts)
        ob_ref[...] += _cat_pad(b_parts)

    if needs_mask:
        # Only tail / overhang tiles pay for the mask; full tiles take the
        # unmasked branch.
        t = pl.program_id(0) * tiles_per_split + k    # flat column-tile index

        @pl.when(t < full_tiles)
        def _full_tile():
            _accumulate(None)

        @pl.when(t >= full_tiles)
        def _ragged_tile():
            col = lax.broadcasted_iota(jnp.int32, pred.shape, 1)
            valid = (t * tile_cols + col) < cols_total
            _accumulate(valid)
    else:
        _accumulate(None)


def _dice_coef_impl(pred, gt, num_classes, assume_labels_in_range):
    pred = jnp.asarray(pred)
    gt = jnp.asarray(gt)
    bsz = pred.shape[0]
    n = 1
    for d in pred.shape[1:]:
        n *= d

    # Labels pass through in their original dtype: no wrapper cast / pad passes
    # over HBM.  (Callers with narrow integer labels get the int8/int16 packed
    # path automatically; no silent wrap-around cast is performed here.)
    itemsize = jnp.dtype(pred.dtype).itemsize
    sub = _pick_sub(n, itemsize)
    rows = bsz * sub
    cols_total = n // sub
    p2 = pred.reshape(rows, cols_total)       # contiguous reshape: no copy
    g2 = gt.reshape(rows, cols_total)

    # Column tile: ~4 MiB per input block, multiple of 128 lanes (or full dim).
    tile_cols = max(_LANE,
                    (_TARGET_BLOCK_BYTES // (rows * itemsize)) // _LANE * _LANE)
    if cols_total <= tile_cols:
        if cols_total % _LANE == 0 or cols_total < _LANE:
            tile_cols = cols_total            # single, exactly-covering tile
        else:
            tile_cols = (cols_total // _LANE) * _LANE
    num_tiles = -(-cols_total // tile_cols)

    # Split column tiles over a leading "parallel" axis (both v7x TensorCores);
    # on 1-TC v5e/v6e this is just a nested loop.
    n_splits = 2 if num_tiles >= 2 else 1
    tiles_per_split = -(-num_tiles // n_splits)
    full_tiles = cols_total // tile_cols
    needs_mask = (full_tiles * tile_cols != cols_total) or (
        n_splits * tiles_per_split != num_tiles)

    if n_splits * tiles_per_split == num_tiles:
        def _col_index(s, k):
            return s * tiles_per_split + k
    else:
        def _col_index(s, k):
            # Overhang tiles re-read the last real tile; the in-kernel mask
            # zeroes their contribution.
            return jnp.minimum(s * tiles_per_split + k, num_tiles - 1)

    lanes = max(_LANE, -(-num_classes // _LANE) * _LANE)
    derive_last = bool(assume_labels_in_range) and num_classes >= 2

    kernel = functools.partial(
        _dice_kernel,
        num_classes=num_classes,
        derive_last=derive_last,
        tile_cols=tile_cols,
        cols_total=cols_total,
        tiles_per_split=tiles_per_split,
        full_tiles=full_tiles,
        needs_mask=needs_mask,
        lanes=lanes,
    )

    acc_shape = jax.ShapeDtypeStruct((n_splits, rows, lanes), jnp.int32)
    out_spec = pl.BlockSpec((None, rows, lanes), lambda s, k: (s, 0, 0))
    in_spec = pl.BlockSpec((rows, tile_cols), lambda s, k: (0, _col_index(s, k)))

    inter, a_cnt, b_cnt = pl.pallas_call(
        kernel,
        out_shape=(acc_shape, acc_shape, acc_shape),
        grid=(n_splits, tiles_per_split),
        in_specs=[in_spec, in_spec],
        out_specs=(out_spec, out_spec, out_spec),
        compiler_params=pltpu.CompilerParams(
            dimension_semantics=("parallel", "arbitrary"),
            vmem_limit_bytes=32 * 1024 * 1024,
        ),
    )(p2, g2)

    # Tiny O(B*C) finalize in plain JAX (fused into the same jit): fold splits
    # and sub-rows, then the dice formula.
    def _fold(x):
        x = x[:, :, :num_classes].sum(axis=0)                    # (rows, C)
        return x.reshape(bsz, sub, num_classes).sum(axis=1).astype(jnp.float32)

    inter = _fold(inter)
    a_sum = _fold(a_cnt)
    b_sum = _fold(b_cnt)

    if derive_last:
        c = num_classes - 1
        match_total = inter[:, c:]        # lane C-1 carried sum(pred == gt)
        i_expl, a_expl, b_expl = inter[:, :c], a_sum[:, :c], b_sum[:, :c]
        n_f = jnp.float32(n)
        inter = jnp.concatenate(
            [i_expl, match_total - i_expl.sum(axis=1, keepdims=True)], axis=1)
        a_sum = jnp.concatenate(
            [a_expl, n_f - a_expl.sum(axis=1, keepdims=True)], axis=1)
        b_sum = jnp.concatenate(
            [b_expl, n_f - b_expl.sum(axis=1, keepdims=True)], axis=1)

    # Reference `mask` is a no-op: mask*dice + (1-mask)*dice == dice.
    dice = 2.0 * inter / (a_sum + b_sum + _EPS)
    label_ratio = b_sum / jnp.float32(n)
    all_dice = jnp.sum(dice * label_ratio, axis=1)               # (B,)
    return jnp.mean(all_dice)


@functools.partial(jax.jit, static_argnums=(2, 3))
def _dice_coef_jit(pred, gt, num_classes, assume_labels_in_range):
    return _dice_coef_impl(pred, gt, num_classes, assume_labels_in_range)


def dice_coef(pred, gt, num_classes, assume_labels_in_range=False):
    """Pallas equivalent of DiceLoss.dice_coef. Returns a scalar (f32).

    assume_labels_in_range=True enables the faster path that derives the last
    class from totals; only valid if every label lies in [0, num_classes)."""
    return _dice_coef_jit(jnp.asarray(pred), jnp.asarray(gt),
                          int(num_classes), bool(assume_labels_in_range))


class DiceLoss:
    """Mirror of the PyTorch module (forward is a no-op in the reference)."""

    def __init__(self, smooth=1.0, activation="sigmoid"):
        self.smooth = smooth          # unused by dice_coef (reference hard-codes 1e-6)
        self.activation = activation  # unused

    def dice_coef(self, pred, gt, num_classes):
        return dice_coef(pred, gt, num_classes)

    def forward(self, pred, gt):
        # Reference forward is `pass` (returns None).
        return None


if __name__ == "__main__":
    key = jax.random.PRNGKey(0)
    k1, k2 = jax.random.split(key)

    batch, H, W = 2, 16, 16
    num_classes = 4

    # Integer class-label maps (kept in their original dtype end-to-end).
    pred = jax.random.randint(k1, (batch, H, W), 0, num_classes, dtype=jnp.int32)
    gt = jax.random.randint(k2, (batch, H, W), 0, num_classes, dtype=jnp.int32)

    loss_mod = DiceLoss(smooth=1.0, activation="sigmoid")
    result = jax.block_until_ready(loss_mod.dice_coef(pred, gt, num_classes))
    # Fast path: last-class stats derived from totals (labels known in range).
    result_fast = jax.block_until_ready(
        dice_coef(pred, gt, num_classes, assume_labels_in_range=True))

    # Pure-JAX reference check of the same formula.
    p2 = pred.reshape(batch, -1)
    g2 = gt.reshape(batch, -1)
    ref = jnp.zeros((batch,), jnp.float32)
    for c in range(num_classes):
        ep = (p2 == c).astype(jnp.float32)
        eg = (g2 == c).astype(jnp.float32)
        inter = jnp.sum(ep * eg, axis=1)
        A = jnp.sum(ep, axis=1)
        B = jnp.sum(eg, axis=1)
        dice = 2.0 * inter / (A + B + 1e-6)
        ref = ref + dice * (B / float(H * W))
    ref = jnp.mean(ref)

    assert jnp.allclose(result, ref, atol=1e-5), (result, ref)
    assert jnp.allclose(result_fast, ref, atol=1e-5), (result_fast, ref)
    print("KERNEL_OK")
</pallas_src>

<mosaic_0001>
module attributes {stable_mosaic.version = 11 : i64} {
  func.func @_dice_kernel(%arg0: i32, %arg1: i32, %arg2: memref<4x128xi32, #tpu.memory_space<vmem>>, %arg3: memref<4x128xi32, #tpu.memory_space<vmem>>, %arg4: memref<1x4x128xi32, #tpu.memory_space<vmem>>, %arg5: memref<1x4x128xi32, #tpu.memory_space<vmem>>, %arg6: memref<1x4x128xi32, #tpu.memory_space<vmem>>) attributes {dimension_semantics = [#tpu.dimension_semantics<parallel>, #tpu.dimension_semantics<arbitrary>], iteration_bounds = array<i64: 1, 1>, scalar_prefetch = 0 : i64, scratch_operands = 0 : i64, tpu.core_type = #tpu.core_type<tc>, window_params = [{transform_indices = @transform_0, window_bounds = array<i64: 4, 128>}, {transform_indices = @transform_1, window_bounds = array<i64: 4, 128>}, {transform_indices = @transform_2, window_bounds = array<i64: 1, 4, 128>}, {transform_indices = @transform_3, window_bounds = array<i64: 1, 4, 128>}, {transform_indices = @transform_4, window_bounds = array<i64: 1, 4, 128>}]} {
    %c0_i32 = arith.constant 0 : i32
    %0 = arith.cmpi eq, %arg1, %c0_i32 : i32
    %1 = arith.extui %0 : i1 to i32
    %c0_i32_0 = arith.constant 0 : i32
    %2 = arith.cmpi ne, %1, %c0_i32_0 : i32
    scf.if %2 {
      %c0_i32_41 = arith.constant 0 : i32
      %85 = vector.broadcast %c0_i32_41 : i32 to vector<4x128xi32>
      %c0_42 = arith.constant 0 : index
      %c0_43 = arith.constant 0 : index
      %c0_44 = arith.constant 0 : index
      %86 = vector.load %arg4[%c0_42, %c0_43, %c0_44] : memref<1x4x128xi32, #tpu.memory_space<vmem>>, vector<1x4x128xi32>
      %87 = vector.shape_cast %86 : vector<1x4x128xi32> to vector<4x128xi32>
      %88 = vector.shape_cast %85 : vector<4x128xi32> to vector<1x4x128xi32>
      tpu.vector_store %arg4[%c0_42, %c0_43, %c0_44], %88 {strides = array<i32>} : memref<1x4x128xi32, #tpu.memory_space<vmem>>, vector<1x4x128xi32>,
      %c0_i32_45 = arith.constant 0 : i32
      %89 = vector.broadcast %c0_i32_45 : i32 to vector<4x128xi32>
      %c0_46 = arith.constant 0 : index
      %c0_47 = arith.constant 0 : index
      %c0_48 = arith.constant 0 : index
      %90 = vector.load %arg5[%c0_46, %c0_47, %c0_48] : memref<1x4x128xi32, #tpu.memory_space<vmem>>, vector<1x4x128xi32>
      %91 = vector.shape_cast %90 : vector<1x4x128xi32> to vector<4x128xi32>
      %92 = vector.shape_cast %89 : vector<4x128xi32> to vector<1x4x128xi32>
      tpu.vector_store %arg5[%c0_46, %c0_47, %c0_48], %92 {strides = array<i32>} : memref<1x4x128xi32, #tpu.memory_space<vmem>>, vector<1x4x128xi32>,
      %c0_i32_49 = arith.constant 0 : i32
      %93 = vector.broadcast %c0_i32_49 : i32 to vector<4x128xi32>
      %c0_50 = arith.constant 0 : index
      %c0_51 = arith.constant 0 : index
      %c0_52 = arith.constant 0 : index
      %94 = vector.load %arg6[%c0_50, %c0_51, %c0_52] : memref<1x4x128xi32, #tpu.memory_space<vmem>>, vector<1x4x128xi32>
      %95 = vector.shape_cast %94 : vector<1x4x128xi32> to vector<4x128xi32>
      %96 = vector.shape_cast %93 : vector<4x128xi32> to vector<1x4x128xi32>
      tpu.vector_store %arg6[%c0_50, %c0_51, %c0_52], %96 {strides = array<i32>} : memref<1x4x128xi32, #tpu.memory_space<vmem>>, vector<1x4x128xi32>,
    } else {
    }
    %c0 = arith.constant 0 : index
    %c0_1 = arith.constant 0 : index
    %3 = vector.load %arg2[%c0, %c0_1] : memref<4x128xi32, #tpu.memory_space<vmem>>, vector<4x128xi32>
    %c0_2 = arith.constant 0 : index
    %c0_3 = arith.constant 0 : index
    %4 = vector.load %arg3[%c0_2, %c0_3] : memref<4x128xi32, #tpu.memory_space<vmem>>, vector<4x128xi32>
    %c0_i32_4 = arith.constant 0 : i32
    %5 = vector.broadcast %c0_i32_4 : i32 to vector<4x128xi32>
    %6 = arith.cmpi eq, %3, %5 : vector<4x128xi32>
    %c0_i32_5 = arith.constant 0 : i32
    %7 = vector.broadcast %c0_i32_5 : i32 to vector<4x128xi32>
    %8 = arith.cmpi eq, %4, %7 : vector<4x128xi32>
    %9 = arith.andi %6, %8 : vector<4x128xi1>
    %10 = arith.extui %9 : vector<4x128xi1> to vector<4x128xi32>
    %cst = arith.constant dense<0> : vector<4xi32>
    %11 = vector.multi_reduction <add>, %10, %cst [1] : vector<4x128xi32> to vector<4xi32>
    %12 = vector.shape_cast %11 : vector<4xi32> to vector<4x1xi32>
    %13 = arith.extui %6 : vector<4x128xi1> to vector<4x128xi32>
    %cst_6 = arith.constant dense<0> : vector<4xi32>
    %14 = vector.multi_reduction <add>, %13, %cst_6 [1] : vector<4x128xi32> to vector<4xi32>
    %15 = vector.shape_cast %14 : vector<4xi32> to vector<4x1xi32>
    %16 = arith.extui %8 : vector<4x128xi1> to vector<4x128xi32>
    %cst_7 = arith.constant dense<0> : vector<4xi32>
    %17 = vector.multi_reduction <add>, %16, %cst_7 [1] : vector<4x128xi32> to vector<4xi32>
    %18 = vector.shape_cast %17 : vector<4xi32> to vector<4x1xi32>
    %c1_i32 = arith.constant 1 : i32
    %19 = vector.broadcast %c1_i32 : i32 to vector<4x128xi32>
    %20 = arith.cmpi eq, %3, %19 : vector<4x128xi32>
    %c1_i32_8 = arith.constant 1 : i32
    %21 = vector.broadcast %c1_i32_8 : i32 to vector<4x128xi32>
    %22 = arith.cmpi eq, %4, %21 : vector<4x128xi32>
    %23 = arith.andi %20, %22 : vector<4x128xi1>
    %24 = arith.extui %23 : vector<4x128xi1> to vector<4x128xi32>
    %cst_9 = arith.constant dense<0> : vector<4xi32>
    %25 = vector.multi_reduction <add>, %24, %cst_9 [1] : vector<4x128xi32> to vector<4xi32>
    %26 = vector.shape_cast %25 : vector<4xi32> to vector<4x1xi32>
    %27 = arith.extui %20 : vector<4x128xi1> to vector<4x128xi32>
    %cst_10 = arith.constant dense<0> : vector<4xi32>
    %28 = vector.multi_reduction <add>, %27, %cst_10 [1] : vector<4x128xi32> to vector<4xi32>
    %29 = vector.shape_cast %28 : vector<4xi32> to vector<4x1xi32>
    %30 = arith.extui %22 : vector<4x128xi1> to vector<4x128xi32>
    %cst_11 = arith.constant dense<0> : vector<4xi32>
    %31 = vector.multi_reduction <add>, %30, %cst_11 [1] : vector<4x128xi32> to vector<4xi32>
    %32 = vector.shape_cast %31 : vector<4xi32> to vector<4x1xi32>
    %c2_i32 = arith.constant 2 : i32
    %33 = vector.broadcast %c2_i32 : i32 to vector<4x128xi32>
    %34 = arith.cmpi eq, %3, %33 : vector<4x128xi32>
    %c2_i32_12 = arith.constant 2 : i32
    %35 = vector.broadcast %c2_i32_12 : i32 to vector<4x128xi32>
    %36 = arith.cmpi eq, %4, %35 : vector<4x128xi32>
    %37 = arith.andi %34, %36 : vector<4x128xi1>
    %38 = arith.extui %37 : vector<4x128xi1> to vector<4x128xi32>
    %cst_13 = arith.constant dense<0> : vector<4xi32>
    %39 = vector.multi_reduction <add>, %38, %cst_13 [1] : vector<4x128xi32> to vector<4xi32>
    %40 = vector.shape_cast %39 : vector<4xi32> to vector<4x1xi32>
    %41 = arith.extui %34 : vector<4x128xi1> to vector<4x128xi32>
    %cst_14 = arith.constant dense<0> : vector<4xi32>
    %42 = vector.multi_reduction <add>, %41, %cst_14 [1] : vector<4x128xi32> to vector<4xi32>
    %43 = vector.shape_cast %42 : vector<4xi32> to vector<4x1xi32>
    %44 = arith.extui %36 : vector<4x128xi1> to vector<4x128xi32>
    %cst_15 = arith.constant dense<0> : vector<4xi32>
    %45 = vector.multi_reduction <add>, %44, %cst_15 [1] : vector<4x128xi32> to vector<4xi32>
    %46 = vector.shape_cast %45 : vector<4xi32> to vector<4x1xi32>
    %c3_i32 = arith.constant 3 : i32
    %47 = vector.broadcast %c3_i32 : i32 to vector<4x128xi32>
    %48 = arith.cmpi eq, %3, %47 : vector<4x128xi32>
    %c3_i32_16 = arith.constant 3 : i32
    %49 = vector.broadcast %c3_i32_16 : i32 to vector<4x128xi32>
    %50 = arith.cmpi eq, %4, %49 : vector<4x128xi32>
    %51 = arith.andi %48, %50 : vector<4x128xi1>
    %52 = arith.extui %51 : vector<4x128xi1> to vector<4x128xi32>
    %cst_17 = arith.constant dense<0> : vector<4xi32>
    %53 = vector.multi_reduction <add>, %52, %cst_17 [1] : vector<4x128xi32> to vector<4xi32>
    %54 = vector.shape_cast %53 : vector<4xi32> to vector<4x1xi32>
    %55 = arith.extui %48 : vector<4x128xi1> to vector<4x128xi32>
    %cst_18 = arith.constant dense<0> : vector<4xi32>
    %56 = vector.multi_reduction <add>, %55, %cst_18 [1] : vector<4x128xi32> to vector<4xi32>
    %57 = vector.shape_cast %56 : vector<4xi32> to vector<4x1xi32>
    %58 = arith.extui %50 : vector<4x128xi1> to vector<4x128xi32>
    %cst_19 = arith.constant dense<0> : vector<4xi32>
    %59 = vector.multi_reduction <add>, %58, %cst_19 [1] : vector<4x128xi32> to vector<4xi32>
    %60 = vector.shape_cast %59 : vector<4xi32> to vector<4x1xi32>
    %c0_20 = arith.constant 0 : index
    %c0_21 = arith.constant 0 : index
    %c0_22 = arith.constant 0 : index
    %61 = vector.load %arg4[%c0_20, %c0_21, %c0_22] : memref<1x4x128xi32, #tpu.memory_space<vmem>>, vector<1x4x128xi32>
    %62 = vector.shape_cast %61 : vector<1x4x128xi32> to vector<4x128xi32>
    %c0_i32_23 = arith.constant 0 : i32
    %63 = vector.broadcast %c0_i32_23 : i32 to vector<4x124xi32>
    %64 = tpu.concatenate %12, %26, %40, %54, %63 in 1 : vector<4x1xi32>, vector<4x1xi32>, vector<4x1xi32>, vector<4x1xi32>, vector<4x124xi32> -> vector<4x128xi32>
    %65 = arith.addi %62, %64 : vector<4x128xi32>
    %c0_24 = arith.constant 0 : index
    %c0_25 = arith.constant 0 : index
    %c0_26 = arith.constant 0 : index
    %66 = vector.load %arg4[%c0_24, %c0_25, %c0_26] : memref<1x4x128xi32, #tpu.memory_space<vmem>>, vector<1x4x128xi32>
    %67 = vector.shape_cast %66 : vector<1x4x128xi32> to vector<4x128xi32>
    %68 = vector.shape_cast %65 : vector<4x128xi32> to vector<1x4x128xi32>
    tpu.vector_store %arg4[%c0_24, %c0_25, %c0_26], %68 {strides = array<i32>} : memref<1x4x128xi32, #tpu.memory_space<vmem>>, vector<1x4x128xi32>,
    %c0_27 = arith.constant 0 : index
    %c0_28 = arith.constant 0 : index
    %c0_29 = arith.constant 0 : index
    %69 = vector.load %arg5[%c0_27, %c0_28, %c0_29] : memref<1x4x128xi32, #tpu.memory_space<vmem>>, vector<1x4x128xi32>
    %70 = vector.shape_cast %69 : vector<1x4x128xi32> to vector<4x128xi32>
    %c0_i32_30 = arith.constant 0 : i32
    %71 = vector.broadcast %c0_i32_30 : i32 to vector<4x124xi32>
    %72 = tpu.concatenate %15, %29, %43, %57, %71 in 1 : vector<4x1xi32>, vector<4x1xi32>, vector<4x1xi32>, vector<4x1xi32>, vector<4x124xi32> -> vector<4x128xi32>
    %73 = arith.addi %70, %72 : vector<4x128xi32>
    %c0_31 = arith.constant 0 : index
    %c0_32 = arith.constant 0 : index
    %c0_33 = arith.constant 0 : index
    %74 = vector.load %arg5[%c0_31, %c0_32, %c0_33] : memref<1x4x128xi32, #tpu.memory_space<vmem>>, vector<1x4x128xi32>
    %75 = vector.shape_cast %74 : vector<1x4x128xi32> to vector<4x128xi32>
    %76 = vector.shape_cast %73 : vector<4x128xi32> to vector<1x4x128xi32>
    tpu.vector_store %arg5[%c0_31, %c0_32, %c0_33], %76 {strides = array<i32>} : memref<1x4x128xi32, #tpu.memory_space<vmem>>, vector<1x4x128xi32>,
    %c0_34 = arith.constant 0 : index
    %c0_35 = arith.constant 0 : index
    %c0_36 = arith.constant 0 : index
    %77 = vector.load %arg6[%c0_34, %c0_35, %c0_36] : memref<1x4x128xi32, #tpu.memory_space<vmem>>, vector<1x4x128xi32>
    %78 = vector.shape_cast %77 : vector<1x4x128xi32> to vector<4x128xi32>
    %c0_i32_37 = arith.constant 0 : i32
    %79 = vector.broadcast %c0_i32_37 : i32 to vector<4x124xi32>
    %80 = tpu.concatenate %18, %32, %46, %60, %79 in 1 : vector<4x1xi32>, vector<4x1xi32>, vector<4x1xi32>, vector<4x1xi32>, vector<4x124xi32> -> vector<4x128xi32>
    %81 = arith.addi %78, %80 : vector<4x128xi32>
    %c0_38 = arith.constant 0 : index
    %c0_39 = arith.constant 0 : index
    %c0_40 = arith.constant 0 : index
    %82 = vector.load %arg6[%c0_38, %c0_39, %c0_40] : memref<1x4x128xi32, #tpu.memory_space<vmem>>, vector<1x4x128xi32>
    %83 = vector.shape_cast %82 : vector<1x4x128xi32> to vector<4x128xi32>
    %84 = vector.shape_cast %81 : vector<4x128xi32> to vector<1x4x128xi32>
    tpu.vector_store %arg6[%c0_38, %c0_39, %c0_40], %84 {strides = array<i32>} : memref<1x4x128xi32, #tpu.memory_space<vmem>>, vector<1x4x128xi32>,
    return
  }
  func.func @transform_0(%arg0: i32, %arg1: i32) -> (i32, i32) {
    %c1_i32 = arith.constant 1 : i32
    %0 = arith.muli %arg0, %c1_i32 : i32
    %1 = arith.addi %0, %arg1 : i32
    %c0_i32 = arith.constant 0 : i32
    %c0_i32_0 = arith.constant 0 : i32
    return %c0_i32, %1 : i32, i32
  }
  func.func @transform_1(%arg0: i32, %arg1: i32) -> (i32, i32) {
    %c1_i32 = arith.constant 1 : i32
    %0 = arith.muli %arg0, %c1_i32 : i32
    %1 = arith.addi %0, %arg1 : i32
    %c0_i32 = arith.constant 0 : i32
    %c0_i32_0 = arith.constant 0 : i32
    return %c0_i32, %1 : i32, i32
  }
  func.func @transform_2(%arg0: i32, %arg1: i32) -> (i32, i32, i32) {
    %c0_i32 = arith.constant 0 : i32
    %c0_i32_0 = arith.constant 0 : i32
    %c0_i32_1 = arith.constant 0 : i32
    return %arg0, %c0_i32, %c0_i32_0 : i32, i32, i32
  }
  func.func @transform_3(%arg0: i32, %arg1: i32) -> (i32, i32, i32) {
    %c0_i32 = arith.constant 0 : i32
    %c0_i32_0 = arith.constant 0 : i32
    %c0_i32_1 = arith.constant 0 : i32
    return %arg0, %c0_i32, %c0_i32_0 : i32, i32, i32
  }
  func.func @transform_4(%arg0: i32, %arg1: i32) -> (i32, i32, i32) {
    %c0_i32 = arith.constant 0 : i32
    %c0_i32_0 = arith.constant 0 : i32
    %c0_i32_1 = arith.constant 0 : i32
    return %arg0, %c0_i32, %c0_i32_0 : i32, i32, i32
  }
}

</mosaic_0001>

<bundles_post_ra>
// kernel: _dice_coef_jit.1
= control target key start
LH: loop header
LB: loop body
LE: loop exit
PB: predicated region body
PF: predicated region fallthrough
CT: control target
= control target key end

     0   :  { %vm61_vm0 = vcmask 1043456   ;;  %v288_v2 = vmov 0   ;;  %vm239_vm13 = vcmask 7168   ;;  %vm241_vm14 = vcmask 15360   ;;  %s414_s1 = inlined_call_operand.vmem [shape: s32[4,128], index: 1, kind: input, shape index: {}]   ;;  %s415_s0 = inlined_call_operand.vmem [shape: s32[4,128], index: 0, kind: input, shape index: {}]   ;;  %s416_s2 = inlined_call_operand.vmem [shape: s32[1,4,128], index: 2, kind: output, shape index: {0}]   ;;  %s417_s3 = inlined_call_operand.vmem [shape: s32[1,4,128], index: 3, kind: output, shape index: {1}]   ;;  %s418_s4 = inlined_call_operand.vmem [shape: s32[1,4,128], index: 4, kind: output, shape index: {2}]  }
   0x1   :  { %v317_v0 = vld [vmem:[%s414_s1] sm:$0xf]  ;;  %52 = vst [vmem:[%s416_s2] sm:$0xf] %v288_v2  ;;  %53 = vst [vmem:[%s417_s3] sm:$0xf] %v288_v2  ;;  %vm243_vm15 = vcmask 23552  }
   0x2   :  { %v322_v1 = vld [vmem:[%s415_s0] sm:$0xf]  ;;  %vm58_vm1 = vcmp.eq.s32.totalorder %v317_v0, 0  ;;  %vm104_vm3 = vcmp.eq.s32.totalorder %v317_v0, 1  ;;  %vm149_vm8 = vcmp.eq.s32.totalorder %v317_v0, 2  ;;  %vm194_vm11 = vcmp.eq.s32.totalorder %v317_v0, 3 }
   0x3   :  { %vm57_vm2 = vcmp.eq.s32.totalorder %v322_v1, 0  ;;  %vm103_vm4 = vcmp.eq.s32.totalorder %v322_v1, 1  ;;  %v89_v3 = vsel %vm58_vm1, 1, %v288_v2  ;;  %v134_v5 = vsel %vm104_vm3, 1, %v288_v2  ;;  %54 = vst [vmem:[%s418_s4] sm:$0xf] %v288_v2 }
   0x4   :  { %v75_v4 = vsel %vm57_vm2, 1, %v288_v2  ;;  %vm59_vm5 = vmand %vm57_vm2, %vm58_vm1  ;;  %v120_v6 = vsel %vm103_vm4, 1, %v288_v2  ;;  %v90_v7 = vsel %vm61_vm0, %v89_v3, 0  ;;  %v335_v9 = vsel %vm61_vm0, %v134_v5, 0 }
   0x5   :  { %v76_v8 = vsel %vm61_vm0, %v75_v4, 0  ;;  %v121_v10 = vsel %vm61_vm0, %v120_v6, 0  ;;  %vm105_vm6 = vmand %vm103_vm4, %vm104_vm3  ;;  %v92_v11 = vshrl.u32 %v90_v7, 16  ;;  %v137_v13 = vshrl.u32 %v335_v9, 16 }
   0x6   :  { %v78_v12 = vshrl.u32 %v76_v8, 16  ;;  %v123_v14 = vshrl.u32 %v121_v10, 16  ;;  %v106_v15 = vsel %vm105_vm6, 1, %v288_v2  ;;  %v60_v16 = vsel %vm59_vm5, 1, %v288_v2 }
   0x7   :  { %vm148_vm7 = vcmp.eq.s32.totalorder %v322_v1, 2  ;;  %v94_v17 = vcvt.s32.f32 %v92_v11  ;;  %v139_v19 = vcvt.s32.f32 %v137_v13  ;;  %v107_v20 = vsel %vm61_vm0, %v106_v15, 0 }
   0x8   :  { %v80_v18 = vcvt.s32.f32 %v78_v12  ;;  %vm150_vm9 = vmand %vm148_vm7, %vm149_vm8  ;;  %v62_v21 = vsel %vm61_vm0, %v60_v16, 0  ;;  %v165_v22 = vsel %vm148_vm7, 1, %v288_v2  ;;  %v125_v24 = vcvt.s32.f32 %v123_v14 }
   0x9   :  { %v151_v23 = vsel %vm150_vm9, 1, %v288_v2  ;;  %97 = vadd.xlane.f32.xlu1 %v94_v17  ;;  %v109_v25 = vshrl.u32 %v107_v20, 16  ;;  %v64_v26 = vshrl.u32 %v62_v21, 16  ;;  %v166_v27 = vsel %vm61_vm0, %v165_v22, 0 }
   0xa   :  { %83 = vadd.xlane.f32.xlu0 %v80_v18  ;;  %v152_v28 = vsel %vm61_vm0, %v151_v23, 0  ;;  %v179_v29 = vsel %vm149_vm8, 1, %v288_v2  ;;  %v168_v30 = vshrl.u32 %v166_v27, 16  ;;  %v63_v36 = vand.u32 65535, %v62_v21 }
   0xb   :  { %v111_v31 = vcvt.s32.f32 %v109_v25  ;;  %v66_v32 = vcvt.s32.f32 %v64_v26  ;;  %v154_v33 = vshrl.u32 %v152_v28, 16  ;;  %v180_v34 = vsel %vm61_vm0, %v179_v29, 0 }
   0xc   :  { %v170_v35 = vcvt.s32.f32 %v168_v30  ;;  %v182_v38 = vshrl.u32 %v180_v34, 16  ;;  %vm193_vm10 = vcmp.eq.s32.totalorder %v322_v1, 3  ;;  %v65_v40 = vcvt.s32.f32 %v63_v36 }
   0xd   :  { %142 = vadd.xlane.f32.xlu1 %v139_v19  ;;  %v156_v37 = vcvt.s32.f32 %v154_v33  ;;  %vm195_vm12 = vmand %vm193_vm10, %vm194_vm11  ;;  %v77_v41 = vand.u32 65535, %v76_v8  ;;  %v91_v42 = vand.u32 65535, %v90_v7  ;;  %v108_v46 = vand.u32 65535, %v107_v20 }
   0xe   :  { %128 = vadd.xlane.f32.xlu0 %v125_v24  ;;  %v184_v39 = vcvt.s32.f32 %v182_v38  ;;  %v196_v43 = vsel %vm195_vm12, 1, %v288_v2  ;;  %v122_v47 = vand.u32 65535, %v121_v10  ;;  %v210_v49 = vsel %vm193_vm10, 1, %v288_v2 }
   0xf   :  { %v79_v44 = vcvt.s32.f32 %v77_v41  ;;  %v93_v45 = vcvt.s32.f32 %v91_v42  ;;  %v197_v48 = vsel %vm61_vm0, %v196_v43, 0  ;;  %v224_v50 = vsel %vm194_vm11, 1, %v288_v2 }
  0x10   :  { %v110_v51 = vcvt.s32.f32 %v108_v46  ;;  %v124_v52 = vcvt.s32.f32 %v122_v47  ;;  %v136_v53 = vand.u32 65535, %v335_v9  ;;  %v199_v54 = vshrl.u32 %v197_v48, 16 }
  0x11   :  { %114 = vadd.xlane.f32.xlu1 %v111_v31  ;;  %v211_v55 = vsel %vm61_vm0, %v210_v49, 0  ;;  %v225_v56 = vsel %vm61_vm0, %v224_v50, 0  ;;  %v153_v63 = vand.u32 65535, %v152_v28  ;;  %v167_v0 = vand.u32 65535, %v166_v27 }
  0x12   :  { %69 = vadd.xlane.f32.xlu0 %v66_v32  ;;  %v138_v57 = vcvt.s32.f32 %v136_v53  ;;  %v201_v58 = vcvt.s32.f32 %v199_v54  ;;  %v213_v59 = vshrl.u32 %v211_v55, 16  ;;  %v227_v60 = vshrl.u32 %v225_v56, 16 }
  0x13   :  { %v155_v1 = vcvt.s32.f32 %v153_v63  ;;  %v169_v3 = vcvt.s32.f32 %v167_v0  ;;  %v181_v4 = vand.u32 65535, %v180_v34  ;;  %v198_v5 = vand.u32 65535, %v197_v48 }
  0x14   :  { %v215_v61 = vcvt.s32.f32 %v213_v59  ;;  %v229_v62 = vcvt.s32.f32 %v227_v60  ;;  %v212_v8 = vand.u32 65535, %v211_v55  ;;  %v226_v9 = vand.u32 65535, %v225_v56 }
  0x15   :  { %173 = vadd.xlane.f32.xlu1 %v170_v35  ;;  %v183_v6 = vcvt.s32.f32 %v181_v4  ;;  %v200_v7 = vcvt.s32.f32 %v198_v5  ;;  %vm245_vm0 = vcmask 31744  }
  0x16   :  { %159 = vadd.xlane.f32.xlu0 %v156_v37  ;;  %v214_v10 = vcvt.s32.f32 %v212_v8  ;;  %v228_v11 = vcvt.s32.f32 %v226_v9 }
  0x19   :  { %67 = vadd.xlane.f32.xlu1 %v65_v40 }
  0x1a   :  { %187 = vadd.xlane.f32.xlu0 %v184_v39 }
  0x1d   :  { %95 = vadd.xlane.f32.xlu1 %v93_v45 }
  0x1e   :  { %81 = vadd.xlane.f32.xlu0 %v79_v44 }
  0x21   :  { %126 = vadd.xlane.f32.xlu1 %v124_v52 }
  0x22   :  { %112 = vadd.xlane.f32.xlu0 %v110_v51 }
  0x25   :  { %204 = vadd.xlane.f32.xlu1 %v201_v58 }
  0x26   :  { %140 = vadd.xlane.f32.xlu0 %v138_v57 }
  0x29   :  { %232 = vadd.xlane.f32.xlu1 %v229_v62 }
  0x2a   :  { %218 = vadd.xlane.f32.xlu0 %v215_v61 }
  0x2d   :  { %171 = vadd.xlane.f32.xlu1 %v169_v3 }
  0x2e   :  { %157 = vadd.xlane.f32.xlu0 %v155_v1 }
  0x31   :  { %202 = vadd.xlane.f32.xlu1 %v200_v7 }
  0x32   :  { %185 = vadd.xlane.f32.xlu0 %v183_v6 }
  0x35   :  { %230 = vadd.xlane.f32.xlu1 %v228_v11 }
  0x36   :  { %216 = vadd.xlane.f32.xlu0 %v214_v10 }
  0x96   :  { %v98_v12 = vpop.xlane.xlu1 %97 }
  0x97   :  { %v84_v13 = vpop.xlane.xlu0 %83  ;;  %v100_v28 = vcvt.f32.s32 %v98_v12 }
  0x98   :  { %v86_v29 = vcvt.f32.s32 %v84_v13 }
  0x99   :  { %v101_v35 = vshll.u32 %v100_v28, 16 }
  0x9a   :  { %v143_v14 = vpop.xlane.xlu1 %142  ;;  %v87_v38 = vshll.u32 %v86_v29, 16 }
  0x9b   :  { %v129_v15 = vpop.xlane.xlu0 %128  ;;  %v145_v30 = vcvt.f32.s32 %v143_v14 }
  0x9c   :  { %v131_v36 = vcvt.f32.s32 %v129_v15  ;;  %v238_v15 = vld [vmem:[%s416_s2] sm:$0xf] }
  0x9d   :  { %v146_v39 = vshll.u32 %v145_v30, 16  ;;  %v249_v30 = vld [vmem:[%s417_s3] sm:$0xf] }
  0x9e   :  { %v115_v16 = vpop.xlane.xlu1 %114  ;;  %v132_v52 = vshll.u32 %v131_v36, 16 }
  0x9f   :  { %v70_v17 = vpop.xlane.xlu0 %69  ;;  %v117_v2 = vcvt.f32.s32 %v115_v16 }
  0xa0   :  { %v72_v33 = vcvt.f32.s32 %v70_v17 }
  0xa1   :  { %v118_v40 = vshll.u32 %v117_v2, 16  ;;  %v256_v2 = vld [vmem:[%s418_s4] sm:$0xf] }
  0xa2   :  { %v174_v18 = vpop.xlane.xlu1 %173  ;;  %v73_v44 = vshll.u32 %v72_v33, 16 }
  0xa3   :  { %v160_v19 = vpop.xlane.xlu0 %159  ;;  %v176_v45 = vcvt.f32.s32 %v174_v18 }
  0xa4   :  { %v162_v34 = vcvt.f32.s32 %v160_v19 }
  0xa5   :  { %v177_v3 = vshll.u32 %v176_v45, 16 }
  0xa6   :  { %v68_v21 = vpop.xlane.xlu1 %67  ;;  %v163_v48 = vshll.u32 %v162_v34, 16 }
  0xa7   :  { %v188_v20 = vpop.xlane.xlu0 %187  ;;  %v71_v41 = vcvt.f32.s32 %v68_v21 }
  0xa8   :  { %v190_v49 = vcvt.f32.s32 %v188_v20 }
  0xa9   :  { %v74_v56 = vadd.s32 %v73_v44, %v71_v41 }
  0xaa   :  { %v96_v23 = vpop.xlane.xlu1 %95  ;;  %v191_v4 = vshll.u32 %v190_v49, 16 }
  0xab   :  { %v82_v22 = vpop.xlane.xlu0 %81  ;;  %v99_v53 = vcvt.f32.s32 %v96_v23 }
  0xac   :  { %v85_v50 = vcvt.f32.s32 %v82_v22 }
  0xad   :  { %v102_v7 = vadd.s32 %v101_v35, %v99_v53 }
  0xae   :  { %v127_v25 = vpop.xlane.xlu1 %126  ;;  %v88_v5 = vadd.s32 %v87_v38, %v85_v50 }
  0xaf   :  { %v113_v24 = vpop.xlane.xlu0 %112  ;;  %v130_v51 = vcvt.f32.s32 %v127_v25 }
  0xb0   :  { %v116_v37 = vcvt.f32.s32 %v113_v24 }
  0xb1   :  { %v133_v6 = vadd.s32 %v132_v52, %v130_v51 }
  0xb2   :  { %v205_v27 = vpop.xlane.xlu1 %204  ;;  %v119_v54 = vadd.s32 %v118_v40, %v116_v37 }
  0xb3   :  { %v141_v26 = vpop.xlane.xlu0 %140  ;;  %v207_v46 = vcvt.f32.s32 %v205_v27  ;;  %v250_v22 = vsel %vm239_vm13, %v88_v5, %v133_v6 }
  0xb4   :  { %v144_v55 = vcvt.f32.s32 %v141_v26  ;;  %v240_v8 = vsel %vm239_vm13, %v74_v56, %v119_v54 }
  0xb5   :  { %v208_v62 = vshll.u32 %v207_v46, 16 }
  0xb6   :  { %v233_v32 = vpop.xlane.xlu1 %232  ;;  %v147_v9 = vadd.s32 %v146_v39, %v144_v55 }
  0xb7   :  { %v219_v31 = vpop.xlane.xlu0 %218  ;;  %v235_v63 = vcvt.f32.s32 %v233_v32 }
  0xb8   :  { %v221_v57 = vcvt.f32.s32 %v219_v31  ;;  %v257_v24 = vsel %vm239_vm13, %v102_v7, %v147_v9 }
  0xb9   :  { %v236_v18 = vshll.u32 %v235_v63, 16 }
  0xba   :  { %v172_v43 = vpop.xlane.xlu1 %171  ;;  %v222_v11 = vshll.u32 %v221_v57, 16 }
  0xbb   :  { %v158_v42 = vpop.xlane.xlu0 %157  ;;  %v175_v59 = vcvt.f32.s32 %v172_v43 }
  0xbc   :  { %v161_v47 = vcvt.f32.s32 %v158_v42 }
  0xbd   :  { %v178_v13 = vadd.s32 %v177_v3, %v175_v59 }
  0xbe   :  { %v164_v58 = vadd.s32 %v163_v48, %v161_v47  ;;  %v203_v61 = vpop.xlane.xlu1 %202 }
  0xbf   :  { %v186_v60 = vpop.xlane.xlu0 %185  ;;  %v206_v1 = vcvt.f32.s32 %v203_v61  ;;  %v251_v28 = vsel %vm241_vm14, %v250_v22, %v178_v13 }
  0xc0   :  { %v189_v0 = vcvt.f32.s32 %v186_v60  ;;  %v242_v12 = vsel %vm241_vm14, %v240_v8, %v164_v58 }
  0xc1   :  { %v209_v10 = vadd.s32 %v208_v62, %v206_v1 }
  0xc2   :  { %v192_v14 = vadd.s32 %v191_v4, %v189_v0  ;;  %v231_v17 = vpop.xlane.xlu1 %230 }
  0xc3   :  { %v217_v16 = vpop.xlane.xlu0 %216  ;;  %v244_v19 = vsel %vm243_vm15, %v242_v12, %v209_v10  ;;  %v234_v21 = vcvt.f32.s32 %v231_v17 }
  0xc4   :  { %v220_v20 = vcvt.f32.s32 %v217_v16  ;;  %v246_v23 = vsel %vm245_vm0, %v244_v19, 0  ;;  %v258_v29 = vsel %vm241_vm14, %v257_v24, %v192_v14 }
  0xc5   :  { %v247_v25 = vadd.s32 %v246_v23, %v238_v15  ;;  %v237_v27 = vadd.s32 %v236_v18, %v234_v21 }
  0xc6   :  { %v223_v26 = vadd.s32 %v222_v11, %v220_v20 }
  0xc7   :  { %248 = vst [vmem:[%s416_s2] sm:$0xf] %v247_v25  ;;  %v259_v32 = vsel %vm243_vm15, %v258_v29, %v237_v27 }
  0xc8   :  { %v252_v31 = vsel %vm243_vm15, %v251_v28, %v223_v26  ;;  %v260_v34 = vsel %vm245_vm0, %v259_v32, 0 }
  0xc9   :  { %v253_v33 = vsel %vm245_vm0, %v252_v31, 0  ;;  %v261_v36 = vadd.s32 %v260_v34, %v256_v2 }
  0xca   :  { %v254_v35 = vadd.s32 %v253_v33, %v249_v30 }
  0xcb   :  { %262 = vst [vmem:[%s418_s4] sm:$0xf] %v261_v36 }
  0xcc   :  { %255 = vst [vmem:[%s417_s3] sm:$0xf] %v254_v35 }

</bundles_post_ra>
